<compile_context>
chip_gen: v7x
topology: tpu7x:2x2x1
jax: 0.10.0
libtpu: 0.0.40
codegen_flags: <defaults>
</compile_context>

<pallas_src>
from functools import partial

import jax
import jax.numpy as jnp
from jax.experimental import pallas as pl
from jax.experimental.pallas import tpu as pltpu


def _copy_kernel(x_ref, o_ref):
    # Whole-tile copy (identity forward).
    o_ref[...] = x_ref[...]


def _sublane_multiple(dtype) -> int:
    # f32 -> 8 sublanes, bf16/f16 -> 16, int8/fp8 -> 32 (packed sublanes).
    return max(8, 32 // max(jnp.dtype(dtype).itemsize, 1))


def _pick_lane_width(total: int, sub: int) -> int:
    """Largest lane width (multiple of 128) dividing `total` exactly.

    Prefers widths that still leave >= `sub` rows (full sublane occupancy).
    Returns 0 if `total` is not a multiple of 128 (ragged fallback).
    """
    for cand in (1024, 512, 256, 128):
        if total % cand == 0 and total // cand >= sub:
            return cand
    for cand in (1024, 512, 256, 128):
        if total % cand == 0:
            return cand
    return 0


@partial(jax.jit, donate_argnums=(0,))
def base_model_forward(x: jnp.ndarray) -> jnp.ndarray:
    """Identity forward pass of BaseModel as a lane-dense Pallas TPU copy."""
    orig_shape = x.shape
    dtype = x.dtype
    itemsize = jnp.dtype(dtype).itemsize
    total = int(x.size)
    if total == 0:
        return x

    sub = _sublane_multiple(dtype)

    # ---- lane-dense, pad-free 2D factorization (main path) ----
    L = _pick_lane_width(total, sub)
    if L:
        rows, pad_elems = total // L, 0
    else:
        # TODO(synk): rare ragged case (element count not a multiple of 128) —
        # pad the flat vector up to one lane multiple; main path stays pad-free.
        L = 128
        rows = -(-total // L)
        pad_elems = rows * L - total

    x2 = x.reshape(-1)
    if pad_elems:
        x2 = jnp.pad(x2, (0, pad_elems))
    x2 = x2.reshape(rows, L)

    # ---- row-tile selection: ~2 MiB per block ----
    # in+out, double-buffered => 4 live blocks ~= 8 MiB, safe on every
    # generation (v5e 16 MiB scoped default, v6e 128 MiB, v7x 64 MiB VMEM).
    target_block_bytes = 2 * 1024 * 1024
    tr = max(sub, (target_block_bytes // (L * itemsize)) // sub * sub)
    if rows <= tr:
        if rows >= 2 * sub:
            # Fits in one block, but split into 2 so both v7x TensorCores get
            # work (grid axis is "parallel").
            tr = -(-rows // (2 * sub)) * sub
        else:
            tr = rows  # block == full array dims (always a legal block shape)
    grid_rows = -(-rows // tr)  # cdiv; ragged last block is masked by Pallas

    out2 = pl.pallas_call(
        _copy_kernel,
        out_shape=jax.ShapeDtypeStruct((rows, L), dtype),
        grid_spec=pltpu.PrefetchScalarGridSpec(
            num_scalar_prefetch=0,
            grid=(grid_rows,),
            in_specs=[pl.BlockSpec((tr, L), lambda i: (i, 0))],
            out_specs=pl.BlockSpec((tr, L), lambda i: (i, 0)),
        ),
        compiler_params=pltpu.CompilerParams(
            dimension_semantics=("parallel",),
            vmem_limit_bytes=32 * 1024 * 1024,
        ),
        cost_estimate=pl.CostEstimate(
            flops=0,
            transcendentals=0,
            bytes_accessed=2 * rows * L * itemsize,
        ),
        # In-place identity: output aliases the (donated) input buffer.
        input_output_aliases={0: 0},
    )(x2)

    if pad_elems:
        out2 = out2.reshape(-1)[:total]
    return out2.reshape(orig_shape)


if __name__ == "__main__":
    key = jax.random.PRNGKey(0)
    shape, dtype = (2, 4, 16, 16), jnp.float32
    x = jax.random.normal(key, shape, dtype=dtype)

    y = base_model_forward(x)  # x is donated (in-place identity pass-through)
    jax.block_until_ready(y)

    # Regenerate expected values from the same key (x's buffer was donated).
    expected = jax.random.normal(key, shape, dtype=dtype)
    assert y.shape == expected.shape and y.dtype == expected.dtype
    assert bool(jnp.array_equal(y, expected)), "identity forward mismatch"
    print("KERNEL_OK")
</pallas_src>

<mosaic_0001>
module attributes {stable_mosaic.version = 11 : i64} {
  func.func @_copy_kernel(%arg0: i32, %arg1: memref<8x256xf32, #tpu.memory_space<vmem>>, %arg2: memref<8x256xf32, #tpu.memory_space<vmem>>) attributes {dimension_semantics = [#tpu.dimension_semantics<parallel>], iteration_bounds = array<i64: 1>, scalar_prefetch = 0 : i64, scratch_operands = 0 : i64, tpu.core_type = #tpu.core_type<tc>, window_params = [{transform_indices = @transform_0, window_bounds = array<i64: 8, 256>}, {transform_indices = @transform_1, window_bounds = array<i64: 8, 256>}]} {
    %c0 = arith.constant 0 : index
    %c0_0 = arith.constant 0 : index
    %0 = vector.load %arg1[%c0, %c0_0] : memref<8x256xf32, #tpu.memory_space<vmem>>, vector<8x256xf32>
    %c0_1 = arith.constant 0 : index
    %c0_2 = arith.constant 0 : index
    %1 = vector.load %arg2[%c0_1, %c0_2] : memref<8x256xf32, #tpu.memory_space<vmem>>, vector<8x256xf32>
    tpu.vector_store %arg2[%c0_1, %c0_2], %0 {strides = array<i32>} : memref<8x256xf32, #tpu.memory_space<vmem>>, vector<8x256xf32>,
    return
  }
  func.func @transform_0(%arg0: i32) -> (i32, i32) {
    %c0_i32 = arith.constant 0 : i32
    %c0_i32_0 = arith.constant 0 : i32
    return %arg0, %c0_i32 : i32, i32
  }
  func.func @transform_1(%arg0: i32) -> (i32, i32) {
    %c0_i32 = arith.constant 0 : i32
    %c0_i32_0 = arith.constant 0 : i32
    return %arg0, %c0_i32 : i32, i32
  }
}

</mosaic_0001>

<bundles_post_ra>
// kernel: base_model_forward.1
= control target key start
LH: loop header
LB: loop body
LE: loop exit
PB: predicated region body
PF: predicated region fallthrough
CT: control target
= control target key end

     0   :  { %s38_s0 = inlined_call_operand.vmem [shape: f32[8,256], index: 0, kind: input, shape index: {}, may-alias: {0,1}]   ;;  %s39_s1 = inlined_call_operand.vmem [shape: f32[8,256], index: 1, kind: output, shape index: {}, may-alias: {0,1}]  }
   0x1   :  { %v8_v0 = vld [vmem:[%s38_s0] sm:$0xff]  ;;  %v9_v1 = vld [vmem:[%s38_s0 + $0x8] sm:$0xff] }
   0x2   :  { %10 = vst [vmem:[%s39_s1] sm:$0xff] %v8_v0  ;;  %11 = vst [vmem:[%s39_s1 + $0x8] sm:$0xff] %v9_v1 }

</bundles_post_ra>
